<compile_context>
chip_gen: v6e
topology: v6e:2x2x1
jax: 0.10.0
libtpu: 0.0.40
codegen_flags: <defaults>
</compile_context>

<pallas_src>
import functools

import numpy as np
import jax
import jax.numpy as jnp
from jax import lax
from jax.experimental import pallas as pl
from jax.experimental.pallas import tpu as pltpu

EPS = 1e-5  # PyTorch BatchNorm1d default


def _round_up(x, m):
    return (x + m - 1) // m * m


# -------------------------- Pallas kernel ----------------------------------


def fc_bn_kernel(x_ref, w_ref, b_ref, g_ref, beta_ref, o_ref, *, n_valid):
    # x_ref:    [Np, F]       activations (resident across the D grid)
    # w_ref:    [tile_d, F]   Linear weight rows for this column tile
    # b_ref:    [1, tile_d]   Linear bias
    # g_ref:    [1, tile_d]   BN gamma
    # beta_ref: [1, tile_d]   BN beta
    # o_ref:    [Np, tile_d]  output column tile (lane-dense)

    # ---- Linear (+bias) + ReLU: MXU matmul contracting on F (W kept [D, F]),
    #      f32 accumulation regardless of input dtype. ----
    a = lax.dot_general(
        x_ref[...], w_ref[...],
        dimension_numbers=(((1,), (1,)), ((), ())),
        preferred_element_type=jnp.float32,
    )
    a = jnp.maximum(a + b_ref[...], 0.0)                        # [Np, tile_d]

    # Zero any padded rows so they don't pollute the batch statistics.
    n_pad = a.shape[0]
    if n_pad != n_valid:  # static (Python-level) condition
        row = lax.broadcasted_iota(jnp.int32, (n_pad, 1), 0)
        a = jnp.where(row < n_valid, a, 0.0)

    # ---- BatchNorm1d (training mode, biased variance), fused single pass ----
    inv_n = 1.0 / float(n_valid)
    s = jnp.sum(a, axis=0, keepdims=True)                       # [1, tile_d]
    sq = jnp.sum(a * a, axis=0, keepdims=True)                  # [1, tile_d]
    mean = s * inv_n
    # Clamp: E[x^2] - mean^2 can round slightly negative -> rsqrt NaN.
    var = jnp.maximum(sq * inv_n - mean * mean, 0.0)
    scale = lax.rsqrt(var + EPS) * g_ref[...]                   # [1, tile_d]
    shift = beta_ref[...] - mean * scale                        # [1, tile_d]

    # Single lane-dense store of this column tile.
    o_ref[...] = a * scale + shift


# -------------------------- wrapper -----------------------------------------


def preprocess_layer_fc(x, weight, bias, gamma, beta):
    """x: [B, L, F]; weight: [D, F]; bias/gamma/beta: [D].  Returns [B, L, D]."""
    B, L, F = x.shape
    D = weight.shape[0]
    N = B * L

    # bf16 MXU inputs only at realistic model sizes; f32 at toy sizes so the
    # forward matches the f32 PyTorch reference bit-for-tolerance.
    matmul_dtype = jnp.bfloat16 if (F >= 128 and D >= 128) else jnp.float32
    in_bytes = jnp.dtype(matmul_dtype).itemsize

    Np = _round_up(N, 8)        # sublane-aligned row count
    Dp = _round_up(D, 128)      # lane-dense output slab width

    xk = x.reshape(N, F).astype(matmul_dtype)
    if Np != N:
        xk = jnp.pad(xk, ((0, Np - N), (0, 0)))
    wk = weight.astype(matmul_dtype)                      # stays [D, F]
    b2 = bias.astype(jnp.float32).reshape(1, D)
    g2 = gamma.astype(jnp.float32).reshape(1, D)
    be2 = beta.astype(jnp.float32).reshape(1, D)
    if Dp != D:
        wk = jnp.pad(wk, ((0, Dp - D), (0, 0)))
        b2 = jnp.pad(b2, ((0, 0), (0, Dp - D)))
        g2 = jnp.pad(g2, ((0, 0), (0, Dp - D)))
        be2 = jnp.pad(be2, ((0, 0), (0, Dp - D)))

    # ---- Generation-aware tiling (v7x has 64 MiB VMEM vs 128 on v5e/v6e) ----
    try:
        vmem_cap = int(pltpu.get_tpu_info().vmem_capacity_bytes)
    except Exception:
        vmem_cap = 64 * 1024 * 1024
    vmem_limit = min(vmem_cap, 64 * 1024 * 1024)
    budget = vmem_limit // 2    # keep the double-buffered working set <= half

    def working_set(td):
        x_b = 2 * Np * F * in_bytes     # resident input (count both buffers)
        w_b = 2 * td * F * in_bytes     # streamed weight tile
        o_b = 2 * Np * td * 4           # streamed f32 output tile
        v_b = 3 * 2 * td * 4            # bias / gamma / beta rows
        return x_b + w_b + o_b + v_b

    # Largest multiple of 128 that divides Dp and fits the budget (>= 128).
    candidates = [t for t in range(Dp, 0, -128) if Dp % t == 0]
    tile_d = candidates[-1]
    for t in candidates:
        if working_set(t) <= budget:
            tile_d = t
            break
    grid = (Dp // tile_d,)

    cost = pl.CostEstimate(
        flops=2 * N * F * Dp + 10 * N * Dp,
        transcendentals=Dp,
        bytes_accessed=(Np * F * in_bytes + Dp * F * in_bytes
                        + 3 * Dp * 4 + Np * Dp * 4),
    )

    out = pl.pallas_call(
        functools.partial(fc_bn_kernel, n_valid=N),
        out_shape=jax.ShapeDtypeStruct((Np, Dp), jnp.float32),
        grid_spec=pltpu.PrefetchScalarGridSpec(
            num_scalar_prefetch=0,
            grid=grid,
            in_specs=[
                pl.BlockSpec((Np, F), lambda j: (0, 0)),        # x (resident)
                pl.BlockSpec((tile_d, F), lambda j: (j, 0)),    # W rows
                pl.BlockSpec((1, tile_d), lambda j: (0, j)),    # bias
                pl.BlockSpec((1, tile_d), lambda j: (0, j)),    # gamma
                pl.BlockSpec((1, tile_d), lambda j: (0, j)),    # beta
            ],
            out_specs=pl.BlockSpec((Np, tile_d), lambda j: (0, j)),
        ),
        compiler_params=pltpu.CompilerParams(
            dimension_semantics=("parallel",),
            vmem_limit_bytes=int(vmem_limit),
        ),
        cost_estimate=cost,
    )(xk, wk, b2, g2, be2)

    return out[:N, :D].reshape(B, L, D)


# -------------------------- params & reference ------------------------------


def init_params(key, input_feature, d_model):
    k0, k1, k2, k3 = jax.random.split(key, 4)
    weight = 0.3 * jax.random.normal(k0, (d_model, input_feature), jnp.float32)
    bias = 0.1 * jax.random.normal(k1, (d_model,), jnp.float32)
    gamma = 1.0 + 0.1 * jax.random.normal(k2, (d_model,), jnp.float32)
    beta = 0.1 * jax.random.normal(k3, (d_model,), jnp.float32)
    return weight, bias, gamma, beta


def reference(x, weight, bias, gamma, beta):
    """Plain-JAX reference matching the PyTorch forward (training-mode BN)."""
    B, L, F = x.shape
    y = x.astype(jnp.float32) @ weight.T + bias              # [B, L, D]
    y = jnp.maximum(y, 0.0)
    flat = y.reshape(B * L, -1)
    mean = flat.mean(axis=0, keepdims=True)
    var = ((flat - mean) ** 2).mean(axis=0, keepdims=True)   # biased variance
    yn = (flat - mean) / jnp.sqrt(var + EPS) * gamma + beta
    return yn.reshape(B, L, -1)


# -------------------------- main ---------------------------------------------


if __name__ == "__main__":
    B, L, F, D = 2, 8, 16, 32   # x: [B, L, F] -> out: [B, L, D]

    key = jax.random.PRNGKey(0)
    kx, kp = jax.random.split(key)
    x = jax.random.normal(kx, (B, L, F), jnp.float32)
    weight, bias, gamma, beta = init_params(kp, F, D)

    out = preprocess_layer_fc(x, weight, bias, gamma, beta)
    out = jax.block_until_ready(out)

    ref = reference(x, weight, bias, gamma, beta)
    np.testing.assert_allclose(np.asarray(out), np.asarray(ref), rtol=1e-4, atol=1e-4)

    print("KERNEL_OK")
</pallas_src>

<mosaic_0001>
module attributes {stable_mosaic.version = 11 : i64} {
  func.func @fc_bn_kernel(%arg0: i32, %arg1: memref<16x16xf32, #tpu.memory_space<vmem>>, %arg2: memref<128x16xf32, #tpu.memory_space<vmem>>, %arg3: memref<1x128xf32, #tpu.memory_space<vmem>>, %arg4: memref<1x128xf32, #tpu.memory_space<vmem>>, %arg5: memref<1x128xf32, #tpu.memory_space<vmem>>, %arg6: memref<16x128xf32, #tpu.memory_space<vmem>>) attributes {dimension_semantics = [#tpu.dimension_semantics<parallel>], iteration_bounds = array<i64: 1>, scalar_prefetch = 0 : i64, scratch_operands = 0 : i64, tpu.core_type = #tpu.core_type<tc>, window_params = [{pipeline_mode = #tpu.pipeline_mode<synchronous>, transform_indices = @transform_0, window_bounds = array<i64: 16, 16>}, {transform_indices = @transform_1, window_bounds = array<i64: 128, 16>}, {transform_indices = @transform_2, window_bounds = array<i64: 1, 128>}, {transform_indices = @transform_3, window_bounds = array<i64: 1, 128>}, {transform_indices = @transform_4, window_bounds = array<i64: 1, 128>}, {transform_indices = @transform_5, window_bounds = array<i64: 16, 128>}]} {
    %c0 = arith.constant 0 : index
    %c0_0 = arith.constant 0 : index
    %0 = vector.load %arg1[%c0, %c0_0] : memref<16x16xf32, #tpu.memory_space<vmem>>, vector<16x16xf32>
    %c0_1 = arith.constant 0 : index
    %c0_2 = arith.constant 0 : index
    %1 = vector.load %arg2[%c0_1, %c0_2] : memref<128x16xf32, #tpu.memory_space<vmem>>, vector<128x16xf32>
    %cst = arith.constant dense<0.000000e+00> : vector<16x128xf32>
    %2 = tpu.matmul %0, %1, %cst {dimension_numbers = #tpu.dot_dimension_numbers<[1], [1], [0], [0], [0, 0, 1, 0], [], []>} : vector<16x16xf32>, vector<128x16xf32>, vector<16x128xf32> -> vector<16x128xf32>
    %c0_3 = arith.constant 0 : index
    %c0_4 = arith.constant 0 : index
    %3 = vector.load %arg3[%c0_3, %c0_4] : memref<1x128xf32, #tpu.memory_space<vmem>>, vector<1x128xf32>
    %4 = vector.broadcast %3 : vector<1x128xf32> to vector<16x128xf32>
    %5 = arith.addf %2, %4 : vector<16x128xf32>
    %cst_5 = arith.constant 0.000000e+00 : f32
    %6 = vector.broadcast %cst_5 : f32 to vector<16x128xf32>
    %7 = arith.maximumf %5, %6 : vector<16x128xf32>
    %cst_6 = arith.constant dense<0.000000e+00> : vector<128xf32>
    %8 = vector.multi_reduction <add>, %7, %cst_6 [0] : vector<16x128xf32> to vector<128xf32>
    %9 = vector.shape_cast %8 : vector<128xf32> to vector<1x128xf32>
    %10 = arith.mulf %7, %7 : vector<16x128xf32>
    %cst_7 = arith.constant dense<0.000000e+00> : vector<128xf32>
    %11 = vector.multi_reduction <add>, %10, %cst_7 [0] : vector<16x128xf32> to vector<128xf32>
    %12 = vector.shape_cast %11 : vector<128xf32> to vector<1x128xf32>
    %cst_8 = arith.constant 6.250000e-02 : f32
    %13 = vector.broadcast %cst_8 : f32 to vector<1x128xf32>
    %14 = arith.mulf %9, %13 : vector<1x128xf32>
    %cst_9 = arith.constant 6.250000e-02 : f32
    %15 = vector.broadcast %cst_9 : f32 to vector<1x128xf32>
    %16 = arith.mulf %12, %15 : vector<1x128xf32>
    %17 = arith.mulf %14, %14 : vector<1x128xf32>
    %18 = arith.subf %16, %17 : vector<1x128xf32>
    %cst_10 = arith.constant 0.000000e+00 : f32
    %19 = vector.broadcast %cst_10 : f32 to vector<1x128xf32>
    %20 = arith.maximumf %18, %19 : vector<1x128xf32>
    %cst_11 = arith.constant 9.99999974E-6 : f32
    %21 = vector.broadcast %cst_11 : f32 to vector<1x128xf32>
    %22 = arith.addf %20, %21 : vector<1x128xf32>
    %23 = math.rsqrt %22 : vector<1x128xf32>
    %c0_12 = arith.constant 0 : index
    %c0_13 = arith.constant 0 : index
    %24 = vector.load %arg4[%c0_12, %c0_13] : memref<1x128xf32, #tpu.memory_space<vmem>>, vector<1x128xf32>
    %25 = arith.mulf %23, %24 : vector<1x128xf32>
    %c0_14 = arith.constant 0 : index
    %c0_15 = arith.constant 0 : index
    %26 = vector.load %arg5[%c0_14, %c0_15] : memref<1x128xf32, #tpu.memory_space<vmem>>, vector<1x128xf32>
    %27 = arith.mulf %14, %25 : vector<1x128xf32>
    %28 = arith.subf %26, %27 : vector<1x128xf32>
    %29 = vector.broadcast %25 : vector<1x128xf32> to vector<16x128xf32>
    %30 = arith.mulf %7, %29 : vector<16x128xf32>
    %31 = vector.broadcast %28 : vector<1x128xf32> to vector<16x128xf32>
    %32 = arith.addf %30, %31 : vector<16x128xf32>
    %c0_16 = arith.constant 0 : index
    %c0_17 = arith.constant 0 : index
    %33 = vector.load %arg6[%c0_16, %c0_17] : memref<16x128xf32, #tpu.memory_space<vmem>>, vector<16x128xf32>
    tpu.vector_store %arg6[%c0_16, %c0_17], %32 {strides = array<i32>} : memref<16x128xf32, #tpu.memory_space<vmem>>, vector<16x128xf32>,
    return
  }
  func.func @transform_0(%arg0: i32) -> (i32, i32) {
    %c0_i32 = arith.constant 0 : i32
    %c0_i32_0 = arith.constant 0 : i32
    %c0_i32_1 = arith.constant 0 : i32
    return %c0_i32, %c0_i32_0 : i32, i32
  }
  func.func @transform_1(%arg0: i32) -> (i32, i32) {
    %c0_i32 = arith.constant 0 : i32
    %c0_i32_0 = arith.constant 0 : i32
    return %arg0, %c0_i32 : i32, i32
  }
  func.func @transform_2(%arg0: i32) -> (i32, i32) {
    %c0_i32 = arith.constant 0 : i32
    %c0_i32_0 = arith.constant 0 : i32
    return %c0_i32, %arg0 : i32, i32
  }
  func.func @transform_3(%arg0: i32) -> (i32, i32) {
    %c0_i32 = arith.constant 0 : i32
    %c0_i32_0 = arith.constant 0 : i32
    return %c0_i32, %arg0 : i32, i32
  }
  func.func @transform_4(%arg0: i32) -> (i32, i32) {
    %c0_i32 = arith.constant 0 : i32
    %c0_i32_0 = arith.constant 0 : i32
    return %c0_i32, %arg0 : i32, i32
  }
  func.func @transform_5(%arg0: i32) -> (i32, i32) {
    %c0_i32 = arith.constant 0 : i32
    %c0_i32_0 = arith.constant 0 : i32
    return %c0_i32, %arg0 : i32, i32
  }
}

</mosaic_0001>

<bundles_post_ra>
// kernel: tpu_custom_call.1
= control target key start
LH: loop header
LB: loop body
LE: loop exit
PB: predicated region body
PF: predicated region fallthrough
CT: control target
= control target key end

     0   :  { %vm46_vm0 = vcmask 130048   ;;  %s470_s0 = inlined_call_operand.vmem [shape: f32[16,16], index: 0, kind: input, shape index: {}]   ;;  %s471_s1 = inlined_call_operand.vmem [shape: f32[128,16], index: 1, kind: input, shape index: {}]   ;;  %s472_s2 = inlined_call_operand.vmem [shape: f32[1,128], index: 2, kind: input, shape index: {}]   ;;  %s473_s3 = inlined_call_operand.vmem [shape: f32[1,128], index: 3, kind: input, shape index: {}]   ;;  %s474_s4 = inlined_call_operand.vmem [shape: f32[1,128], index: 4, kind: input, shape index: {}]   ;;  %s475_s5 = inlined_call_operand.hbm [shape: f32[16,128], index: 5, kind: output, shape index: {}]  }
   0x1   :  { %v38_v0 = vld [vmem:[%s471_s1 + $0x78] sm:$0xff]  ;;  %v37_v1 = vld [vmem:[%s471_s1 + $0x70] sm:$0xff]  ;;  %v36_v2 = vld [vmem:[%s471_s1 + $0x68] sm:$0xff] }
   0x2   :  { %275 = vmatprep.subr.msk.mxu0 %vm46_vm0, %v38_v0  ;;  %v21_v3 = vld [vmem:[%s470_s0] sm:$0xff] }
   0x3   :  { %276 = vmatpush3.xpose.msk.msra.mxu0 %vm46_vm0, %v38_v0  ;;  %307 = vmatprep.mubr.msk.f32.mxu0 %vm46_vm0, %v21_v3 }
   0x4   :  { %277 = vmatprep.subr.msk.mxu0 %vm46_vm0, %v37_v1 }
   0x7   :  { %278 = vmatpush3.xpose.msk.msra.mxu0 %vm46_vm0, %v37_v1 }
   0x8   :  { %10 = vsyncpa [#allocation3], 0  ;;  %279 = vmatprep.subr.msk.mxu0 %vm46_vm0, %v36_v2  ;;  %v35_v4 = vld [vmem:[%s471_s1 + $0x60] sm:$0xff]  ;;  %v34_v5 = vld [vmem:[%s471_s1 + $0x58] sm:$0xff]  ;;  %v206_v47 = vlaneseq  ;;  %s337_s7 = smov [#allocation2]  }
   0x9   :  { %v33_v6 = vld [vmem:[%s471_s1 + $0x50] sm:$0xff]  ;;  %v32_v7 = vld [vmem:[%s471_s1 + $0x48] sm:$0xff]  ;;  %v31_v8 = vld [vmem:[%s471_s1 + $0x40] sm:$0xff]  ;;  %s227_s8 = sshll.u32 %s337_s7, 4  ;;  %s228_s8 = int_to_ptr.vmem [resolvable:$true] %s227_s8 }
   0xa   :  { %v30_v9 = vld [vmem:[%s471_s1 + $0x38] sm:$0xff]  ;;  %v29_v10 = vld [vmem:[%s471_s1 + $0x30] sm:$0xff]  ;;  %v28_v11 = vld [vmem:[%s471_s1 + $0x28] sm:$0xff]  ;;  %v207_v48 = vshrl.u32 %v206_v47, 7  ;;  %p320_p1 = scmp.lt.s32.totalorder %s228_s8, %s228_s8 }
   0xb   :  { %280 = vmatpush3.xpose.msk.msra.mxu0 %vm46_vm0, %v36_v2  ;;  %v27_v12 = vld [vmem:[%s471_s1 + $0x20] sm:$0xff]  ;;  %v26_v13 = vld [vmem:[%s471_s1 + $0x18] sm:$0xff]  ;;  %v25_v14 = vld [vmem:[%s471_s1 + $0x10] sm:$0xff] }
   0xc   :  { %281 = vmatprep.subr.msk.mxu0 %vm46_vm0, %v35_v4  ;;  %v24_v15 = vld [vmem:[%s471_s1 + $0x8] sm:$0xff]  ;;  %v23_v16 = vld [vmem:[%s471_s1] sm:$0xff]  ;;  %v208_v50 = vsub.s32 0, %v207_v48 }
   0xd   :  { %v22_v17 = vld [vmem:[%s470_s0 + $0x8] sm:$0xff]  ;;  %v238_v18 = vld [vmem:[%s472_s2] ss:$0 sm:$0xff] }
   0xe   :  { %v201_v49 = vld [vmem:[%s473_s3] sm:$0x1]  ;;  %s315_s3 = scalar_lea.vmem %s228_s8, 256 }
   0xf   :  { %282 = vmatpush3.xpose.msk.msra.mxu0 %vm46_vm0, %v35_v4  ;;  %v203_v53 = vld [vmem:[%s474_s4] sm:$0x1]  ;;  %p316_p0 = scmp.ne.s32.totalorder %s228_s8, %s315_s3  ;;  %p321_p2 = scmp.lt.s32.totalorder %s315_s3, %s315_s3 }
  0x10   :  { %283 = vmatprep.subr.msk.mxu0 %vm46_vm0, %v34_v5 }
  0x11   :  { %p322_p3 = por %p321_p2, %p320_p1 }
  0x13   :  { %284 = vmatpush3.xpose.msk.msra.mxu0 %vm46_vm0, %v34_v5  ;;  %p323_p4 = pnand %p322_p3, %p316_p0 }
  0x14   :  { %285 = vmatprep.subr.msk.mxu0 %vm46_vm0, %v33_v6 }
  0x17   :  { %286 = vmatpush3.xpose.msk.msra.mxu0 %vm46_vm0, %v33_v6 }
  0x18   :  { %287 = vmatprep.subr.msk.mxu0 %vm46_vm0, %v32_v7 }
  0x1b   :  { %288 = vmatpush3.xpose.msk.msra.mxu0 %vm46_vm0, %v32_v7 }
  0x1c   :  { %289 = vmatprep.subr.msk.mxu0 %vm46_vm0, %v31_v8 }
  0x1f   :  { %290 = vmatpush3.xpose.msk.msra.mxu0 %vm46_vm0, %v31_v8 }
  0x20   :  { %291 = vmatprep.subr.msk.mxu0 %vm46_vm0, %v30_v9 }
  0x23   :  { %292 = vmatpush3.xpose.msk.msra.mxu0 %vm46_vm0, %v30_v9 }
  0x24   :  { %293 = vmatprep.subr.msk.mxu0 %vm46_vm0, %v29_v10 }
  0x27   :  { %294 = vmatpush3.xpose.msk.msra.mxu0 %vm46_vm0, %v29_v10 }
  0x28   :  { %295 = vmatprep.subr.msk.mxu0 %vm46_vm0, %v28_v11 }
  0x2b   :  { %296 = vmatpush3.xpose.msk.msra.mxu0 %vm46_vm0, %v28_v11 }
  0x2c   :  { %297 = vmatprep.subr.msk.mxu0 %vm46_vm0, %v27_v12 }
  0x2f   :  { %298 = vmatpush3.xpose.msk.msra.mxu0 %vm46_vm0, %v27_v12 }
  0x30   :  { %299 = vmatprep.subr.msk.mxu0 %vm46_vm0, %v26_v13 }
  0x33   :  { %300 = vmatpush3.xpose.msk.msra.mxu0 %vm46_vm0, %v26_v13 }
  0x34   :  { %301 = vmatprep.subr.msk.mxu0 %vm46_vm0, %v25_v14 }
  0x37   :  { %302 = vmatpush3.xpose.msk.msra.mxu0 %vm46_vm0, %v25_v14 }
  0x38   :  { %303 = vmatprep.subr.msk.mxu0 %vm46_vm0, %v24_v15 }
  0x3b   :  { %304 = vmatpush3.xpose.msk.msra.mxu0 %vm46_vm0, %v24_v15 }
  0x3c   :  { %305 = vmatprep.subr.msk.mxu0 %vm46_vm0, %v23_v16 }
  0x3f   :  { %306 = vmatpush3.xpose.msk.msra.mxu0 %vm46_vm0, %v23_v16 }
  0x42   :  { %308 = vmatmul.mubr.msk.f32.vlgmr.msra.gmra.mxu0 %vm46_vm0, %v22_v17 }
 0x102   :  { %v309_v19 = vpop.f32.mrf.mxu0 }
 0x103   :  { %v173_v20 = vadd.f32 %v309_v19, %v238_v18 }
 0x104   :  { %v167_v21 = vpop.f32.mrf.mxu0 }
 0x105   :  { %v177_v22 = vmax.f32 %v173_v20, 0.0  ;;  %v168_v23 = vadd.f32 %v238_v18, %v167_v21 }
 0x107   :  { %v176_v24 = vmax.f32 %v168_v23, 0.0  ;;  %v186_v25 = vmul.f32 %v177_v22, %v177_v22 }
 0x109   :  { %v178_v26 = vadd.f32 %v177_v22, %v176_v24  ;;  %v185_v27 = vmul.f32 %v176_v24, %v176_v24 }
 0x10b   :  { %v179_v28 = vrot.slane %v178_v26, 4  ;;  %v187_v29 = vadd.f32 %v186_v25, %v185_v27 }
 0x10d   :  { %v180_v30 = vadd.f32 %v179_v28, %v178_v26  ;;  %v188_v31 = vrot.slane %v187_v29, 4 }
 0x10f   :  { %v181_v32 = vrot.slane %v180_v30, 2  ;;  %v189_v33 = vadd.f32 %v188_v31, %v187_v29 }
 0x111   :  { %v182_v34 = vadd.f32 %v181_v32, %v180_v30  ;;  %v190_v35 = vrot.slane %v189_v33, 2 }
 0x113   :  { %v183_v36 = vrot.slane %v182_v34, 1  ;;  %v191_v37 = vadd.f32 %v190_v35, %v189_v33 }
 0x115   :  { %v184_v38 = vadd.f32 %v183_v36, %v182_v34  ;;  %v192_v39 = vrot.slane %v191_v37, 1 }
 0x117   :  { %v193_v40 = vadd.f32 %v192_v39, %v191_v37  ;;  %v194_v41 = vmul.f32 0.0625, %v184_v38 }
 0x119   :  { %v195_v42 = vmul.f32 0.0625, %v193_v40  ;;  %v196_v43 = vmul.f32 %v194_v41, %v194_v41 }
 0x11b   :  { %v197_v44 = vsub.f32 %v195_v42, %v196_v43 }
 0x11d   :  { %v198_v45 = vmax.f32 %v197_v44, 0.0 }
 0x11f   :  { %v199_v46 = vadd.f32 1e-05, %v198_v45 }
 0x121   :  { %313 = vrsqrt.f32 %v199_v46 }
 0x12e   :  { %v314_v51 = vpop.eup %313 }
 0x12f   :  { %v202_v52 = vmul.f32 %v314_v51, %v201_v49 }
 0x131   :  { %v204_v54 = vmul.f32 %v202_v52, %v194_v41  ;;  %v209_v55 = vrot.slane %v202_v52, %v208_v50 }
 0x133   :  { %v205_v56 = vsub.f32 %v203_v53, %v204_v54  ;;  %v210_v57 = vmul.f32 %v209_v55, %v176_v24  ;;  %v211_v58 = vmul.f32 %v209_v55, %v177_v22 }
 0x135   :  { %v216_v59 = vrot.slane %v205_v56, %v208_v50 }
 0x137   :  { %v218_v60 = vadd.f32 %v216_v59, %v210_v57  ;;  %v219_v61 = vadd.f32 %v216_v59, %v211_v58 }
 0x139   :  { %220 = vst [vmem:[#allocation2] sm:$0xff] %v218_v60  ;;  %221 = vst [vmem:[#allocation2 + $0x8] sm:$0xff] %v219_v61 }
 0x13a   :  { %326 = shalt.err (!%p323_p4)
}
 0x13b   :  { %s338_s4 = smov 128   ;;  %s339_s9 = smov 8  }
 0x13c   :  { %233 = dma.vmem_to_hbm [thread:$0]  %s228_s8, 256, %s475_s5, [#allocation3], %s338_s4, %s338_s4, %s339_s9  }
 0x13d   :  { %335 = dma.done.wait [#allocation3], 256  }
 0x13e   :  { %336 = vsyncadd [#allocation3], 4294967040 }
 0x13f   :  { %237 = vsyncpa [#allocation3], 1 }

</bundles_post_ra>
